<compile_context>
chip_gen: v6e
topology: v6e:2x2x1
jax: 0.10.0
libtpu: 0.0.40
codegen_flags: <defaults>
</compile_context>

<pallas_src>
import functools

import jax
import jax.numpy as jnp
from jax import lax
from jax.experimental import pallas as pl
from jax.experimental.pallas import tpu as pltpu

_LANE = 128
_SUBLANE = 8


def _round_up(x, m):
    return ((x + m - 1) // m) * m


def _dpsh_loss1_kernel(oh_ref, ut_ref, s_ref, l1_ref, *,
                       tile_n, tiles_per_core, num_train, mask_from_tile):
    """Accumulate sum(S*x - log(1+exp(x))) over one num_train column tile.

    oh_ref : (batch, bit)    bf16, resident — already holds output * 0.5
    ut_ref : (bit, tile_n)   bf16 column tile of U^T
    s_ref  : (batch, tile_n) int8 column tile of S (values in {0, 1})
    l1_ref : (8, 128)        f32 per-slice accumulator; every element carries the
                             same running sum (lane-dense, unmasked stores); the
                             wrapper reads element [0, 0] of each slice's block.
    """
    p = pl.program_id(0)                 # parallel axis (TensorCore slice)
    t = pl.program_id(1)                 # reduction axis over column tiles
    g = p * tiles_per_core + t           # global (unclamped) column-tile index

    @pl.when(t == 0)
    def _init():
        l1_ref[...] = jnp.zeros_like(l1_ref)

    # x = (output / 2) @ U^T for this tile — bf16 operands on the MXU, f32 accum.
    x = jnp.dot(oh_ref[...], ut_ref[...], preferred_element_type=jnp.float32)

    # S*x - log(1+exp(x)) == S*x - max(x,0) - log(1+exp(-|x|))   (overflow-safe)
    s = s_ref[...].astype(jnp.float32)
    term = s * x - jnp.maximum(x, 0.0) - jnp.log(1.0 + jnp.exp(-jnp.abs(x)))

    if mask_from_tile is None:
        # num_train is an exact multiple of tile_n and every grid step maps to a
        # distinct fully-valid tile: no masking anywhere in the hot loop.
        l1_ref[...] += jnp.sum(term, keepdims=True)
    else:
        @pl.when(g < mask_from_tile)                 # steady state: no mask
        def _full_tile():
            l1_ref[...] += jnp.sum(term, keepdims=True)

        @pl.when(g >= mask_from_tile)                # ragged tail / duplicate tiles
        def _tail_tile():
            col = g * tile_n + lax.broadcasted_iota(jnp.int32, term.shape, 1)
            l1_ref[...] += jnp.sum(jnp.where(col < num_train, term, 0.0),
                                   keepdims=True)


def dpsh_loss(output, S, batch_index, U_t, B, num_train, num_label, *,
              tile_n=16384, num_cores=2):
    """Functional equivalent of dpshloss.forward.

    State layout (performance-optimized relative to the PyTorch module):
      U_t : (bit, num_train) bfloat16 — U stored transposed + bf16 so the kernel
            streams it lane-contiguously and contracts its leading dim on the MXU.
      B   : (num_train, bit) float32  — sign codes, as in the module.
      S   : (batch, num_train) — keep it stored as int8 ({0,1}) persistently in
            the training loop; a float S is cast here (one extra HBM pass).

    Returns (loss1, loss2, new_U_t, new_B).  Donate U_t / B under jit in a real
    training loop so the row scatter updates them in place.
    """
    batch, bit = output.shape
    output = output.astype(jnp.float32)

    # --- state update (row scatter), same ordering as the PyTorch loop -------
    if U_t.dtype != jnp.bfloat16:
        U_t = U_t.astype(jnp.bfloat16)
    new_U_t = U_t.at[:, batch_index].set(output.astype(jnp.bfloat16).T)
    new_B = B.at[batch_index].set(jnp.sign(output))

    # --- kernel operand preparation -------------------------------------------
    if S.dtype != jnp.int8:
        # Avoidable full-array pass: store S as int8 persistently instead.
        S = S.astype(jnp.int8)
    out_half = (output * 0.5).astype(jnp.bfloat16)     # fold the /2 into the tiny operand

    denom = jnp.float32(num_train * num_label)
    # loss2 only touches the (batch, bit) output — trivially cheap in plain JAX.
    loss2 = jnp.sum(jnp.square(jnp.sign(output) - output)) / denom

    # --- tiling ----------------------------------------------------------------
    tile_n = max(_LANE, min(int(tile_n), _round_up(num_train, _LANE)))
    tile_n = _round_up(tile_n, _LANE)

    def _tile_bytes(tn):                               # S (int8) + U^T (bf16) per tile
        return batch * tn * 1 + bit * tn * 2

    # Keep the double-buffered tile footprint under ~32 MiB (safe on v7x 64 MiB VMEM).
    while 2 * _tile_bytes(tile_n) > (32 << 20) and tile_n > _LANE:
        tile_n = max(_LANE, _round_up(tile_n // 2, _LANE))

    n_tiles = -(-num_train // tile_n)
    num_cores = max(1, min(int(num_cores), n_tiles))
    tiles_per_core = -(-n_tiles // num_cores)
    total_tiles = tiles_per_core * num_cores

    n_full_tiles = num_train // tile_n                 # tiles with no ragged columns
    mask_from_tile = None if (n_full_tiles == n_tiles == total_tiles) else n_full_tiles

    if total_tiles > n_tiles:
        # A few trailing grid steps are duplicates of the last real tile so the
        # parallel axis divides evenly; clamp their DMA index (in-bounds read)
        # and the kernel masks them out entirely.
        def col_map(p, t):
            return (0, jnp.minimum(p * tiles_per_core + t, n_tiles - 1))
    else:
        def col_map(p, t):
            return (0, p * tiles_per_core + t)

    kernel = functools.partial(
        _dpsh_loss1_kernel, tile_n=tile_n, tiles_per_core=tiles_per_core,
        num_train=num_train, mask_from_tile=mask_from_tile)

    vmem_limit = int(min(48 << 20,
                         max(16 << 20,
                             2 * _tile_bytes(tile_n) + batch * bit * 4 + (4 << 20))))

    l1_part = pl.pallas_call(
        kernel,
        out_shape=jax.ShapeDtypeStruct((num_cores * _SUBLANE, _LANE), jnp.float32),
        grid=(num_cores, tiles_per_core),
        in_specs=[
            pl.BlockSpec((batch, bit), lambda p, t: (0, 0)),   # output/2 (bf16, resident)
            pl.BlockSpec((bit, tile_n), col_map),              # U^T tile (bf16)
            pl.BlockSpec((batch, tile_n), col_map),            # S tile (int8)
        ],
        out_specs=pl.BlockSpec((_SUBLANE, _LANE), lambda p, t: (p, 0)),
        compiler_params=pltpu.CompilerParams(
            dimension_semantics=("parallel", "arbitrary"),
            vmem_limit_bytes=vmem_limit,
        ),
    )(out_half, new_U_t, S)

    # Every element of a slice's (8,128) block holds that slice's total.
    l1_sum = jnp.sum(l1_part.reshape(num_cores, _SUBLANE, _LANE)[:, 0, 0])
    loss1 = l1_sum / denom
    return loss1, loss2, new_U_t, new_B


def _reference(output, S, batch_index, U0_t, num_train, num_label):
    """Pure-JAX reference mirroring the kernel's bf16 matmul operands."""
    U_ref_t = U0_t.astype(jnp.bfloat16).at[:, batch_index].set(
        output.astype(jnp.bfloat16).T).astype(jnp.float32)
    oh = (output * 0.5).astype(jnp.bfloat16).astype(jnp.float32)
    x = oh @ U_ref_t
    s = S.astype(jnp.float32)
    denom = num_train * num_label
    l1 = jnp.sum(s * x - jnp.maximum(x, 0.0)
                 - jnp.log1p(jnp.exp(-jnp.abs(x)))) / denom
    l2 = jnp.sum(jnp.square(jnp.sign(output) - output)) / denom
    return l1, l2


if __name__ == "__main__":
    key = jax.random.PRNGKey(0)
    batch, bit, num_label = 8, 32, 4

    def run_case(subkey, num_train, tile_n):
        k1, k2, k3 = jax.random.split(subkey, 3)
        output = jax.random.normal(k1, (batch, bit), dtype=jnp.float32)
        # Pairwise similarity matrix S in {0,1}, kept as int8 (no per-call cast).
        S = (jax.random.uniform(k2, (batch, num_train)) > 0.5).astype(jnp.int8)
        batch_index = jax.random.permutation(k3, num_train)[:batch]
        U0_t = jnp.zeros((bit, num_train), jnp.bfloat16)
        B0 = jnp.zeros((num_train, bit), jnp.float32)

        l1_ref, l2_ref = _reference(output, S, batch_index, U0_t,
                                    num_train, num_label)

        fn = jax.jit(functools.partial(dpsh_loss, tile_n=tile_n),
                     static_argnums=(5, 6))
        loss1, loss2, U1_t, B1 = fn(output, S, batch_index, U0_t, B0,
                                    num_train, num_label)
        jax.block_until_ready((loss1, loss2, U1_t, B1))

        assert jnp.allclose(loss1, l1_ref, rtol=1e-4, atol=1e-5), \
            (num_train, float(loss1), float(l1_ref))
        assert jnp.allclose(loss2, l2_ref, rtol=1e-4, atol=1e-5), \
            (num_train, float(loss2), float(l2_ref))
        assert jnp.allclose(B1[batch_index], jnp.sign(output))
        assert jnp.allclose(U1_t[:, batch_index].astype(jnp.float32),
                            output.astype(jnp.bfloat16).astype(jnp.float32).T)

    k_a, k_b = jax.random.split(key)
    # Ragged tail + both parallel slices used (n_tiles = 2, tiles_per_core = 1).
    run_case(k_a, num_train=500, tile_n=256)
    # Odd tile count -> clamped, fully-masked duplicate trailing tile path.
    run_case(k_b, num_train=300, tile_n=128)

    print("KERNEL_OK")
</pallas_src>

<mosaic_0001>
module attributes {stable_mosaic.version = 11 : i64} {
  func.func @_dpsh_loss1_kernel(%arg0: i32, %arg1: i32, %arg2: memref<8x32xbf16, #tpu.memory_space<vmem>>, %arg3: memref<32x256xbf16, #tpu.memory_space<vmem>>, %arg4: memref<8x256xi8, #tpu.memory_space<vmem>>, %arg5: memref<8x128xf32, #tpu.memory_space<vmem>>) attributes {dimension_semantics = [#tpu.dimension_semantics<parallel>, #tpu.dimension_semantics<arbitrary>], iteration_bounds = array<i64: 2, 1>, scalar_prefetch = 0 : i64, scratch_operands = 0 : i64, tpu.core_type = #tpu.core_type<tc>, window_params = [{pipeline_mode = #tpu.pipeline_mode<synchronous>, transform_indices = @transform_0, window_bounds = array<i64: 8, 32>}, {transform_indices = @transform_1, window_bounds = array<i64: 32, 256>}, {transform_indices = @transform_2, window_bounds = array<i64: 8, 256>}, {transform_indices = @transform_3, window_bounds = array<i64: 8, 128>}]} {
    %c1_i32 = arith.constant 1 : i32
    %0 = arith.muli %arg0, %c1_i32 : i32
    %1 = arith.addi %0, %arg1 : i32
    %c0_i32 = arith.constant 0 : i32
    %2 = arith.cmpi eq, %arg1, %c0_i32 : i32
    %3 = arith.extui %2 : i1 to i32
    %c0_i32_0 = arith.constant 0 : i32
    %4 = arith.cmpi ne, %3, %c0_i32_0 : i32
    scf.if %4 {
      %cst_13 = arith.constant 0.000000e+00 : f32
      %28 = vector.broadcast %cst_13 : f32 to vector<8x128xf32>
      %c0_14 = arith.constant 0 : index
      %c0_15 = arith.constant 0 : index
      %29 = vector.load %arg5[%c0_14, %c0_15] : memref<8x128xf32, #tpu.memory_space<vmem>>, vector<8x128xf32>
      tpu.vector_store %arg5[%c0_14, %c0_15], %28 {strides = array<i32>} : memref<8x128xf32, #tpu.memory_space<vmem>>, vector<8x128xf32>,
    } else {
    }
    %c0 = arith.constant 0 : index
    %c0_1 = arith.constant 0 : index
    %5 = vector.load %arg2[%c0, %c0_1] : memref<8x32xbf16, #tpu.memory_space<vmem>>, vector<8x32xbf16>
    %c0_2 = arith.constant 0 : index
    %c0_3 = arith.constant 0 : index
    %6 = vector.load %arg3[%c0_2, %c0_3] : memref<32x256xbf16, #tpu.memory_space<vmem>>, vector<32x256xbf16>
    %cst = arith.constant dense<0.000000e+00> : vector<8x256xf32>
    %7 = tpu.matmul %5, %6, %cst {dimension_numbers = #tpu.dot_dimension_numbers<[1], [0], [0], [1], [0, 0, 1, 1], [], []>} : vector<8x32xbf16>, vector<32x256xbf16>, vector<8x256xf32> -> vector<8x256xf32>
    %c0_4 = arith.constant 0 : index
    %c0_5 = arith.constant 0 : index
    %8 = vector.load %arg4[%c0_4, %c0_5] : memref<8x256xi8, #tpu.memory_space<vmem>>, vector<8x256xi8>
    %9 = arith.sitofp %8 : vector<8x256xi8> to vector<8x256xf32>
    %10 = arith.mulf %9, %7 : vector<8x256xf32>
    %cst_6 = arith.constant 0.000000e+00 : f32
    %11 = vector.broadcast %cst_6 : f32 to vector<8x256xf32>
    %12 = arith.maximumf %7, %11 : vector<8x256xf32>
    %13 = arith.subf %10, %12 : vector<8x256xf32>
    %14 = math.absf %7 : vector<8x256xf32>
    %cst_7 = arith.constant 0.000000e+00 : f32
    %15 = vector.broadcast %cst_7 : f32 to vector<8x256xf32>
    %16 = arith.subf %15, %14 : vector<8x256xf32>
    %17 = math.exp %16 : vector<8x256xf32>
    %cst_8 = arith.constant 1.000000e+00 : f32
    %18 = vector.broadcast %cst_8 : f32 to vector<8x256xf32>
    %19 = arith.addf %18, %17 : vector<8x256xf32>
    %20 = math.log %19 : vector<8x256xf32>
    %21 = arith.subf %13, %20 : vector<8x256xf32>
    %c1_i32_9 = arith.constant 1 : i32
    %22 = arith.cmpi slt, %1, %c1_i32_9 : i32
    %23 = arith.extui %22 : i1 to i32
    %c0_i32_10 = arith.constant 0 : i32
    %24 = arith.cmpi ne, %23, %c0_i32_10 : i32
    scf.if %24 {
      %c0_13 = arith.constant 0 : index
      %c0_14 = arith.constant 0 : index
      %28 = vector.load %arg5[%c0_13, %c0_14] : memref<8x128xf32, #tpu.memory_space<vmem>>, vector<8x128xf32>
      %29 = vector.shape_cast %21 : vector<8x256xf32> to vector<1x8x256xf32>
      %cst_15 = arith.constant dense<0.000000e+00> : vector<1xf32>
      %30 = vector.multi_reduction <add>, %29, %cst_15 [1, 2] : vector<1x8x256xf32> to vector<1xf32>
      %31 = vector.shape_cast %30 : vector<1xf32> to vector<1x1x1xf32>
      %32 = vector.extract %31[0, 0, 0] : f32 from vector<1x1x1xf32>
      %33 = vector.broadcast %32 : f32 to vector<1x1xf32>
      %34 = vector.broadcast %33 : vector<1x1xf32> to vector<8x128xf32>
      %35 = arith.addf %28, %34 : vector<8x128xf32>
      %c0_16 = arith.constant 0 : index
      %c0_17 = arith.constant 0 : index
      %36 = vector.load %arg5[%c0_16, %c0_17] : memref<8x128xf32, #tpu.memory_space<vmem>>, vector<8x128xf32>
      tpu.vector_store %arg5[%c0_16, %c0_17], %35 {strides = array<i32>} : memref<8x128xf32, #tpu.memory_space<vmem>>, vector<8x128xf32>,
    } else {
    }
    %c1_i32_11 = arith.constant 1 : i32
    %25 = arith.cmpi sge, %1, %c1_i32_11 : i32
    %26 = arith.extui %25 : i1 to i32
    %c0_i32_12 = arith.constant 0 : i32
    %27 = arith.cmpi ne, %26, %c0_i32_12 : i32
    scf.if %27 {
      %c256_i32 = arith.constant 256 : i32
      %28 = arith.muli %1, %c256_i32 : i32
      %29 = tpu.iota {dimensions = array<i32: 1>} : vector<8x256xi32>
      %30 = vector.broadcast %28 : i32 to vector<8x256xi32>
      %31 = arith.addi %30, %29 : vector<8x256xi32>
      %c0_13 = arith.constant 0 : index
      %c0_14 = arith.constant 0 : index
      %32 = vector.load %arg5[%c0_13, %c0_14] : memref<8x128xf32, #tpu.memory_space<vmem>>, vector<8x128xf32>
      %c500_i32 = arith.constant 500 : i32
      %33 = vector.broadcast %c500_i32 : i32 to vector<8x256xi32>
      %34 = arith.cmpi slt, %31, %33 : vector<8x256xi32>
      %cst_15 = arith.constant 0.000000e+00 : f32
      %35 = vector.broadcast %cst_15 : f32 to vector<8x256xf32>
      %36 = arith.select %34, %21, %35 : vector<8x256xi1>, vector<8x256xf32>
      %37 = vector.shape_cast %36 : vector<8x256xf32> to vector<1x8x256xf32>
      %cst_16 = arith.constant dense<0.000000e+00> : vector<1xf32>
      %38 = vector.multi_reduction <add>, %37, %cst_16 [1, 2] : vector<1x8x256xf32> to vector<1xf32>
      %39 = vector.shape_cast %38 : vector<1xf32> to vector<1x1x1xf32>
      %40 = vector.extract %39[0, 0, 0] : f32 from vector<1x1x1xf32>
      %41 = vector.broadcast %40 : f32 to vector<1x1xf32>
      %42 = vector.broadcast %41 : vector<1x1xf32> to vector<8x128xf32>
      %43 = arith.addf %32, %42 : vector<8x128xf32>
      %c0_17 = arith.constant 0 : index
      %c0_18 = arith.constant 0 : index
      %44 = vector.load %arg5[%c0_17, %c0_18] : memref<8x128xf32, #tpu.memory_space<vmem>>, vector<8x128xf32>
      tpu.vector_store %arg5[%c0_17, %c0_18], %43 {strides = array<i32>} : memref<8x128xf32, #tpu.memory_space<vmem>>, vector<8x128xf32>,
    } else {
    }
    return
  }
  func.func @transform_0(%arg0: i32, %arg1: i32) -> (i32, i32) {
    %c0_i32 = arith.constant 0 : i32
    %c0_i32_0 = arith.constant 0 : i32
    %c0_i32_1 = arith.constant 0 : i32
    return %c0_i32, %c0_i32_0 : i32, i32
  }
  func.func @transform_1(%arg0: i32, %arg1: i32) -> (i32, i32) {
    %c1_i32 = arith.constant 1 : i32
    %0 = arith.muli %arg0, %c1_i32 : i32
    %1 = arith.addi %0, %arg1 : i32
    %c0_i32 = arith.constant 0 : i32
    %c0_i32_0 = arith.constant 0 : i32
    return %c0_i32, %1 : i32, i32
  }
  func.func @transform_2(%arg0: i32, %arg1: i32) -> (i32, i32) {
    %c1_i32 = arith.constant 1 : i32
    %0 = arith.muli %arg0, %c1_i32 : i32
    %1 = arith.addi %0, %arg1 : i32
    %c0_i32 = arith.constant 0 : i32
    %c0_i32_0 = arith.constant 0 : i32
    return %c0_i32, %1 : i32, i32
  }
  func.func @transform_3(%arg0: i32, %arg1: i32) -> (i32, i32) {
    %c0_i32 = arith.constant 0 : i32
    %c0_i32_0 = arith.constant 0 : i32
    return %arg0, %c0_i32 : i32, i32
  }
}

</mosaic_0001>

<bundles_post_ra>
// kernel: dpsh_loss.1
= control target key start
LH: loop header
LB: loop body
LE: loop exit
PB: predicated region body
PF: predicated region fallthrough
CT: control target
= control target key end

     0   :  { %s639_s12 = smov 0   ;;  %s641_s13 = smov 0   ;;  %s725_s0 = inlined_call_operand.vmem [shape: bf16[8,32], index: 0, kind: input, shape index: {}]   ;;  %s726_s1 = inlined_call_operand.vmem [shape: bf16[32,500], index: 1, kind: input, shape index: {}]   ;;  %s727_s2 = inlined_call_operand.vmem [shape: s8[8,500], index: 2, kind: input, shape index: {}]   ;;  %s728_s3 = inlined_call_operand.vmem [shape: f32[16,128], index: 3, kind: output, shape index: {}]  }
   0x1   :  { %s643_s14 = smov 0   ;;  %s645_s15 = smov 0  }
   0x2   :  { %s647_s16 = smov 0  }
   0x3 LB: > { %s25_s17 = sadd.s32 1, %s611_s15  ;;  %p62_p1 = scmp.ne.s32.totalorder %s603_s13, %s599_s12  ;;  %s615_s16 = sphi %s647_s16, %s13_s16   ;;  %s611_s15 = sphi %s645_s15, %s732_s15   ;;  %s607_s14 = sphi %s643_s14, %s731_s14   ;;  %s603_s13 = sphi %s641_s13, %s730_s13   ;;  %s599_s12 = sphi %s639_s12, %s729_s12  }
   0x4   : > { %p27_p0 = scmp.ge.s32.totalorder %s25_s17, 2  ;;  %p63_p2 = scmp.eq.s32.totalorder %s615_s16, 0 }
   0x5   : > { %s55_s19 = sadd.s32 1, %s603_s13  ;;  %p497_p5 = scmp.ge.s32.totalorder %s615_s16, 2 }
   0x6   : > { %s734_s17 = smov (%p27_p0, %s25_s17), 0  ;;  %p64_p3 = por %p63_p2, %p62_p1 }
   0x7   : > { %s52_s18 = ssub.s32 %s611_s15, %s734_s17  ;;  %145 = sbr.rel (%p497_p5) target bundleno = 18 (0x12), region = 20 }
   0x8   : > { %p53_p4 = scmp.eq.s32.totalorder %s52_s18, 0 }
   0xa   : > { %s674_s20 = scalar_select %p53_p4, %s603_s13, %s55_s19  }
   0xc   : > { %148 = sbr.rel (!%p64_p3) target bundleno = 18 (0x12), region = 24  ;;  %s150_s21 = sand.u32 (%p64_p3), 1, %s603_s13  }
   0xd   : > { %s516_s22 = sshll.u32 (%p64_p3), %s611_s15, 3  ;;  %s498_s23 = sshll.u32 (%p64_p3), %s150_s21, 5 }
   0xe   : > { %s156_s26 = scalar_lea.vmem (%p64_p3), %s726_s1, %s516_s22  ;;  %s152_s27 = scalar_lea.vmem (%p64_p3), [#allocation2], %s498_s23 }
   0xf   : > { %v191_v0 = vld [vmem:[%s156_s26] sm:$0xff] (%p64_p3)  ;;  %v193_v1 = vld [vmem:[%s156_s26 + $0x10] sm:$0xff] (%p64_p3) }
  0x10   : > { %v195_v2 = vld [vmem:[%s156_s26 + $0x20] sm:$0xff] (%p64_p3)  ;;  %192 = vst [vmem:[%s152_s27] sm:$0xff] (%p64_p3), %v191_v0  ;;  %194 = vst [vmem:[%s152_s27 + $0x8] sm:$0xff] (%p64_p3), %v193_v1  ;;  %v197_v3 = vld [vmem:[%s156_s26 + $0x30] sm:$0xff] (%p64_p3) }
  0x11   : > { %196 = vst [vmem:[%s152_s27 + $0x10] sm:$0xff] %v195_v2  ;;  %198 = vst [vmem:[%s152_s27 + $0x18] sm:$0xff] %v197_v3 }
  0x12 PF: > { %p501_p6 = scmp.ge.s32.totalorder %s615_s16, 1  ;;  %p214_p7 = scmp.lt.s32.totalorder %s615_s16, 3 }
  0x14   : > { %p215_p8 = pnand %p501_p6, %p214_p7 }
  0x15   : > { %s221_s28 = sand.u32 (!%p215_p8), 1, %s599_s12   ;;  %p259_p9 = scmp.lt.s32.totalorder (!%p215_p8), %s607_s14, 1 }
  0x16   : > { %218 = sbr.rel (%p215_p8) target bundleno = 698 (0x2ba), region = 66  ;;  %s502_s29 = sshll.u32 (!%p215_p8), %s221_s28, 5 }
  0x17   : > { %s223_s4 = scalar_lea.vmem (!%p215_p8), [#allocation2], %s502_s29  ;;  %s503_s11 = sshll.u32 (!%p215_p8), %s607_s14, 1 }
  0x18   : > { %p253_p10 = scmp.lt.s32.totalorder (!%p215_p8), %s503_s11, 3  ;;  %p511_p11 = scmp.ge.s32.totalorder (!%p215_p8), %s607_s14, 1 }
  0x1b   : > { %v617_v4 = vmov 0   ;;  %s260_s30 = scalar_select %p259_p9, %s607_s14, 1  ;;  %v563_v5 = vld [vmem:[%s223_s4 + $0x14] ss:$8 sps:$4 sm:$0xff]   ;;  %v565_v6 = vld [vmem:[%s223_s4 + $0x10] ss:$8 sps:$4 sm:$0xff]  }
  0x1c   : > { %331 = vmatprep.mubr.bf16.mxu0 %v617_v4  ;;  %311 = vmatprep.subr.bf16.mxu0 %v563_v5  ;;  %v566_v7 = vld [vmem:[%s223_s4 + $0x4] ss:$8 sps:$4 sm:$0xff]   ;;  %v568_v8 = vld [vmem:[%s223_s4] ss:$8 sps:$4 sm:$0xff]   ;;  %v618_v9 = vmov 0.0   ;;  %vm295_vm0 = vcmask 261120  }
  0x1d   : > { %s505_s5 = sshll.u32 %s260_s30, 3  ;;  %312 = vmatpush1.bf16.msra.mxu0 %v565_v6  ;;  %v270_v10 = vld [vmem:[%s725_s0] sm:$0xf]  ;;  %s736_s11 = smov (!%p253_p10, %s503_s11), 3 }
  0x1e   : > { %s692_s8 = scalar_lea.vmem %s728_s3, %s505_s5  ;;  %313 = vmatprep.subr.bf16.mxu0 %v566_v7  ;;  %s504_s12 = sshll.u32 %s736_s11, 1 }
  0x1f   : > { %269 = vst [vmem:[%s692_s8] sm:$0xff] %v618_v9  ;;  %s256_s21 = scalar_lea.vmem %s727_s2, %s504_s12 }
  0x20   : > { %v340_v23 = vld [vmem:[%s256_s21] sm:$0xf] }
  0x21   : > { %314 = vmatpush1.bf16.msra.mxu0 %v568_v8  ;;  %v341_v26 = vunpack.c.0.s8 %v340_v23  ;;  %v342_v27 = vunpack.c.1.s8 %v340_v23 }
  0x23   : > { %v343_v28 = vcvt.s32.f32 %v341_v26  ;;  %v344_v29 = vcvt.s32.f32 %v342_v27 }
  0x24   : > { %510 = vmatmul.mubr.msk.bf16.vlgmr.msra.gmra.mxu0 %vm295_vm0, %v270_v10 }
  0xe4   : > { %v333_v11 = vpop.f32.mrf.mxu0 }
  0xe5   : > { %v351_v12 = vand.u32 2147483647, %v333_v11  ;;  %v345_v30 = vmul.f32 %v343_v28, %v333_v11  ;;  %v347_v31 = vmax.f32 %v333_v11, 0.0 }
  0xe6   : > { %v335_v13 = vpop.f32.mrf.mxu0 }
  0xe7   : > { %v353_v14 = vsub.f32 0.0, %v351_v12  ;;  %v352_v15 = vand.u32 2147483647, %v335_v13  ;;  %v346_v33 = vmul.f32 %v344_v29, %v335_v13  ;;  %v348_v34 = vmax.f32 %v335_v13, 0.0 }
  0xe8   : > { %v337_v16 = vpop.f32.mrf.mxu0  ;;  %v349_v35 = vsub.f32 %v345_v30, %v347_v31 }
  0xe9   : > { %v355_v17 = vmul.f32 1.442695, %v353_v14  ;;  %v354_v18 = vsub.f32 0.0, %v352_v15  ;;  %v350_v39 = vsub.f32 %v346_v33, %v348_v34 }
  0xea   : > { %v338_v19 = vpop.f32.mrf.mxu0 }
  0xeb   : > { %569 = vpow2.f32 %v355_v17  ;;  %v357_v20 = vmul.f32 1.442695, %v354_v18 }
  0xed   : > { %571 = vpow2.f32 %v357_v20 }
  0xf8   : > { %v570_v21 = vpop.eup %569 }
  0xf9   : > { %v359_v22 = vadd.f32 1.0, %v570_v21 }
  0xfa   : > { %v572_v24 = vpop.eup %571 }
  0xfb   : > { %573 = vlog2.f32 %v359_v22  ;;  %v360_v25 = vadd.f32 1.0, %v572_v24 }
  0xfd   : > { %575 = vlog2.f32 %v360_v25 }
 0x108   : > { %v574_v32 = vpop.eup %573 }
 0x109   : > { %v362_v36 = vmul.f32 0.6931472, %v574_v32  ;;  %370 = sbr.rel (%p511_p11) target bundleno = 477 (0x1dd), region = 78 }
 0x10a   : > { %v576_v37 = vpop.eup %575 }
 0x10b   : > { %v365_v38 = vsub.f32 %v349_v35, %v362_v36  ;;  %v364_v40 = vmul.f32 0.6931472, %v576_v37 }
 0x10d   : > { %v366_v41 = vsub.f32 %v350_v39, %v364_v40 }
 0x10e   : > { %v371_v50 = vld [vmem:[%s692_s8] sm:$0xff] }
 0x10f   : > { %v372_v42 = vadd.f32 %v366_v41, %v365_v38 }
 0x111   : > { %373 = vadd.xlane.f32.xlu0 %v372_v42 }
 0x19a   : > { %v374_v43 = vpop.xlane.xlu0 %373 }
 0x19b   : > { %v375_v44 = vrot.slane %v374_v43, 4 }
 0x19d   : > { %v376_v45 = vadd.f32 %v375_v44, %v374_v43 }
 0x19f   : > { %v377_v46 = vrot.slane %v376_v45, 2 }
 0x1a1   : > { %v378_v47 = vadd.f32 %v377_v46, %v376_v45 }
 0x1a3   : > { %v379_v48 = vrot.slane %v378_v47, 1 }
 0x1a5   : > { %v380_v49 = vadd.f32 %v379_v48, %v378_v47 }
 0x1a7   : > { %517 = vpush %v380_v49 }
 0x1d8   : > { %s518_s22 = spop %517 }
 0x1d9   : > { %v382_v51 = vstv %s518_s22 }
 0x1da   : > { %v383_v52 = vadd.f32 %v382_v51, %v371_v50 }
 0x1dc   : > { %384 = vst [vmem:[%s692_s8] sm:$0xff] %v383_v52 }
 0x1dd PF: > { %388 = sbr.rel (%p259_p9) target bundleno = 698 (0x2ba), region = 82  ;;  %s513_s23 = sshll.u32 (!%p259_p9), %s607_s14, 8 }
 0x1e2   : > { %v390_v53 = vlaneseq  ;;  %v393_v54 = vstv %s513_s23 }
 0x1e3   : > { %v396_v5 = vld [vmem:[%s692_s8] sm:$0xff] }
 0x1e4   : > { %v391_v55 = vand.u32 127, %v390_v53 }
 0x1e6   : > { %v392_v56 = vadd.s32 128, %v391_v55  ;;  %v394_v57 = vadd.s32 %v393_v54, %v391_v55 }
 0x1e8   : > { %v395_v58 = vadd.s32 %v393_v54, %v392_v56  ;;  %vm397_vm1 = vcmp.lt.s32.totalorder %v394_v57, 500 }
 0x1e9   : > { %v399_v59 = vsel %vm397_vm1, %v365_v38, 0.0 }
 0x1ea   : > { %vm398_vm2 = vcmp.lt.s32.totalorder %v395_v58, 500 }
 0x1eb   : > { %v400_v60 = vsel %vm398_vm2, %v366_v41, 0.0 }
 0x1ec   : > { %v401_v61 = vadd.f32 %v400_v60, %v399_v59 }
 0x1ee   : > { %402 = vadd.xlane.f32.xlu0 %v401_v61 }
 0x277   : > { %v403_v62 = vpop.xlane.xlu0 %402 }
 0x278   : > { %v404_v63 = vrot.slane %v403_v62, 4 }
 0x27a   : > { %v405_v0 = vadd.f32 %v404_v63, %v403_v62 }
 0x27c   : > { %v406_v1 = vrot.slane %v405_v0, 2 }
 0x27e   : > { %v407_v2 = vadd.f32 %v406_v1, %v405_v0 }
 0x280   : > { %v408_v3 = vrot.slane %v407_v2, 1 }
 0x282   : > { %v409_v4 = vadd.f32 %v408_v3, %v407_v2 }
 0x284   : > { %519 = vpush %v409_v4 }
 0x2b5   : > { %s520_s14 = spop %519 }
 0x2b6   : > { %v411_v6 = vstv %s520_s14 }
 0x2b7   : > { %v412_v7 = vadd.f32 %v411_v6, %v396_v5 }
 0x2b9   : > { %413 = vst [vmem:[%s692_s8] sm:$0xff] %v412_v7 }
 0x2ba PF: > { %s13_s16 = sadd.s32 1, %s615_s16   ;;  %s729_s12 = smov %s603_s13 }
 0x2bb   : > { %p10_p12 = scmp.ge.s32.totalorder %s13_s16, 4   ;;  %s730_s13 = smov %s674_s20 }
 0x2bc   : > { %s731_s14 = smov %s611_s15  ;;  %s732_s15 = smov %s734_s17 }
 0x2bd   :  { %12 = sbr.rel (!%p10_p12) target bundleno = 3 (0x3), region = 120 }

</bundles_post_ra>
